<compile_context>
chip_gen: v6e
topology: v6e:2x2x1
jax: 0.10.0
libtpu: 0.0.40
codegen_flags: <defaults>
</compile_context>

<pallas_src>
import jax
import jax.numpy as jnp
from jax.experimental import pallas as pl
from jax.experimental.pallas import tpu as pltpu

LANE = 128


def _round_up(n, m):
    return ((n + m - 1) // m) * m


def _generator_kernel(x_ref, w1_ref, b1_ref, w2_ref, b2_ref, w3_ref, b3_ref,
                      o_ref):
    # x tile arrives in its HBM dtype (f32); cast once in VMEM so all three
    # matmuls run bf16 on the MXU with f32 accumulation.
    x = x_ref[...].astype(jnp.bfloat16)

    # ---- map1 + ELU (alpha = 1.0, PyTorch default) ----
    h1 = jnp.dot(x, w1_ref[...], preferred_element_type=jnp.float32)
    h1 = h1 + b1_ref[...]                        # (1, H) broadcast
    h1 = jnp.where(h1 > 0.0, h1, jnp.exp(jnp.minimum(h1, 0.0)) - 1.0)

    # ---- map2 + sigmoid ----
    h2 = jnp.dot(h1.astype(jnp.bfloat16), w2_ref[...],
                 preferred_element_type=jnp.float32)
    h2 = h2 + b2_ref[...]
    # sigmoid(x) == 0.5 * tanh(0.5*x) + 0.5: one EUP op (tanh), exact.
    h2 = 0.5 * jnp.tanh(0.5 * h2) + 0.5

    # ---- map3 (no activation) ----
    out = jnp.dot(h2.astype(jnp.bfloat16), w3_ref[...],
                  preferred_element_type=jnp.float32)
    out = out + b3_ref[...]

    o_ref[...] = out.astype(o_ref.dtype)


def init_generator_params(key, input_size, hidden_size, output_size):
    """Deterministic init mimicking nn.Linear default U[-1/sqrt(fan_in), ...].

    Weights returned already transposed to (in, out), f32, unpadded."""
    ks = jax.random.split(key, 6)

    def lin(kw, kb, fan_in, fan_out):
        bound = 1.0 / jnp.sqrt(jnp.float32(fan_in))
        w = jax.random.uniform(kw, (fan_in, fan_out), jnp.float32, -bound, bound)
        b = jax.random.uniform(kb, (1, fan_out), jnp.float32, -bound, bound)
        return w, b

    w1, b1 = lin(ks[0], ks[1], input_size, hidden_size)
    w2, b2 = lin(ks[2], ks[3], hidden_size, hidden_size)
    w3, b3 = lin(ks[4], ks[5], hidden_size, output_size)
    return dict(w1=w1, b1=b1, w2=w2, b2=b2, w3=w3, b3=b3)


def prepare_params(params, input_size, hidden_size, output_size):
    """One-time preprocessing: zero-pad only the HIDDEN dims to 128 lanes,
    weights to bf16 (MXU-native), biases stay f32.  Input (K of w1) and output
    (N of w3) dims are left unpadded — their blocks equal the full array dim.

    NOTE(v6e/v7x): if hidden_size >= 256, pad hid to a multiple of 256 so the
    2x256x256 MXU sees full-width tiles; for tiny hidden sizes 128 is the
    minimum lane width and padding further is pure waste."""
    hid_pad = _round_up(hidden_size, LANE)

    def pad2(a, rows, cols):
        return jnp.pad(a, ((0, rows - a.shape[0]), (0, cols - a.shape[1])))

    return dict(
        w1=pad2(params["w1"], input_size, hid_pad).astype(jnp.bfloat16),
        b1=pad2(params["b1"], 1, hid_pad).astype(jnp.float32),
        w2=pad2(params["w2"], hid_pad, hid_pad).astype(jnp.bfloat16),
        b2=pad2(params["b2"], 1, hid_pad).astype(jnp.float32),
        w3=pad2(params["w3"], hid_pad, output_size).astype(jnp.bfloat16),
        b3=params["b3"].astype(jnp.float32),
        input_size=input_size,
        output_size=output_size,
    )


def _batch_dim_semantics():
    kind = jax.devices()[0].device_kind.lower()
    if "v7" in kind and hasattr(pltpu, "CORE_PARALLEL"):
        # v7x has 2 TensorCores per chip; CORE_PARALLEL actually shards the
        # batch grid across them ("parallel" has near-zero codegen effect).
        return (pltpu.CORE_PARALLEL,)
    return ("parallel",)


def _resident_spec(shape):
    # Constant block index -> the block stays resident in VMEM across grid
    # steps; Buffered(1) drops the useless second buffer for it.
    kwargs = {}
    if hasattr(pl, "Buffered"):
        kwargs["pipeline_mode"] = pl.Buffered(1)
    return pl.BlockSpec(shape, lambda i: (0, 0), **kwargs)


def generator_forward(x, prepared, *, block_batch=None):
    """x: (B, input_size) f32. prepared: output of prepare_params()."""
    w1, b1 = prepared["w1"], prepared["b1"]
    w2, b2 = prepared["w2"], prepared["b2"]
    w3, b3 = prepared["w3"], prepared["b3"]
    in_size = prepared["input_size"]
    out_size = prepared["output_size"]

    B = x.shape[0]
    hid_pad = w2.shape[0]

    # Batch tile: 512 rows by default for large batches (~85% of HBM roofline
    # vs ~63% at 256 per measured tiled-copy data); small batches round up to
    # 16 rows (bf16 sublane packing).  VMEM at tm=512 / hid_pad=128 is a few
    # hundred KiB; halve tm if hidden grows to 4-8K on v7x (64 MiB VMEM).
    if block_batch is None:
        tm = 512
    else:
        tm = _round_up(max(block_batch, 16), 16)
    tm = min(tm, _round_up(B, 16))

    # Ragged last block is fine: out-of-bounds output rows are masked on
    # store and the per-row compute never mixes rows.
    grid = (pl.cdiv(B, tm),)

    x_spec = pl.BlockSpec((tm, in_size), lambda i: (i, 0))
    out_spec = pl.BlockSpec((tm, out_size), lambda i: (i, 0))

    matmul_flops = 2 * B * (in_size * hid_pad + hid_pad * hid_pad
                            + hid_pad * out_size)
    cost = pl.CostEstimate(
        flops=int(matmul_flops),
        transcendentals=int(2 * B * hid_pad),      # ELU exp + sigmoid tanh
        bytes_accessed=int(x.size * x.dtype.itemsize
                           + (w1.size + w2.size + w3.size) * 2
                           + (b1.size + b2.size + b3.size) * 4
                           + B * out_size * 4),
    )

    out = pl.pallas_call(
        _generator_kernel,
        out_shape=jax.ShapeDtypeStruct((B, out_size), jnp.float32),
        grid=grid,
        in_specs=[
            x_spec,
            _resident_spec(w1.shape), _resident_spec(b1.shape),
            _resident_spec(w2.shape), _resident_spec(b2.shape),
            _resident_spec(w3.shape), _resident_spec(b3.shape),
        ],
        out_specs=out_spec,
        compiler_params=pltpu.CompilerParams(
            dimension_semantics=_batch_dim_semantics()),
        cost_estimate=cost,
    )(x, w1, b1, w2, b2, w3, b3)

    return out.astype(x.dtype)


def generator_reference(x, p):
    """Pure f32 reference with the original (unpadded, f32) parameters."""
    h1 = x @ p["w1"] + p["b1"]
    h1 = jnp.where(h1 > 0.0, h1, jnp.exp(jnp.minimum(h1, 0.0)) - 1.0)
    h2 = jax.nn.sigmoid(h1 @ p["w2"] + p["b2"])
    return h2 @ p["w3"] + p["b3"]


if __name__ == "__main__":
    input_size, hidden_size, output_size = 16, 32, 8
    batch = 48

    key = jax.random.PRNGKey(0)
    k_x, k_p = jax.random.split(key)
    x = jax.random.normal(k_x, (batch, input_size), dtype=jnp.float32)
    params = init_generator_params(k_p, input_size, hidden_size, output_size)
    prepared = prepare_params(params, input_size, hidden_size, output_size)

    # block_batch=16 forces a 3-step batch grid at this toy size so the
    # tiled/pipelined path is exercised; production default is tm=512.
    out = generator_forward(x, prepared, block_batch=16)
    out = jax.block_until_ready(out)

    ref = generator_reference(x, params)
    assert out.shape == (batch, output_size), out.shape
    # bf16 MXU operands -> relaxed tolerance vs. the pure-f32 reference.
    assert jnp.allclose(out, ref, atol=2e-2, rtol=2e-2), (
        float(jnp.max(jnp.abs(out - ref))))

    print("KERNEL_OK")
</pallas_src>

<mosaic_0001>
module attributes {stable_mosaic.version = 11 : i64} {
  func.func @_generator_kernel(%arg0: i32, %arg1: memref<16x16xf32, #tpu.memory_space<vmem>>, %arg2: memref<16x128xbf16, #tpu.memory_space<vmem>>, %arg3: memref<1x128xf32, #tpu.memory_space<vmem>>, %arg4: memref<128x128xbf16, #tpu.memory_space<vmem>>, %arg5: memref<1x128xf32, #tpu.memory_space<vmem>>, %arg6: memref<128x8xbf16, #tpu.memory_space<vmem>>, %arg7: memref<1x8xf32, #tpu.memory_space<vmem>>, %arg8: memref<16x8xf32, #tpu.memory_space<vmem>>) attributes {dimension_semantics = [#tpu.dimension_semantics<parallel>], iteration_bounds = array<i64: 3>, scalar_prefetch = 0 : i64, scratch_operands = 0 : i64, tpu.core_type = #tpu.core_type<tc>, window_params = [{transform_indices = @transform_0, window_bounds = array<i64: 16, 16>}, {pipeline_mode = #tpu.pipeline_mode<synchronous>, transform_indices = @transform_1, window_bounds = array<i64: 16, 128>}, {pipeline_mode = #tpu.pipeline_mode<synchronous>, transform_indices = @transform_2, window_bounds = array<i64: 1, 128>}, {pipeline_mode = #tpu.pipeline_mode<synchronous>, transform_indices = @transform_3, window_bounds = array<i64: 128, 128>}, {pipeline_mode = #tpu.pipeline_mode<synchronous>, transform_indices = @transform_4, window_bounds = array<i64: 1, 128>}, {pipeline_mode = #tpu.pipeline_mode<synchronous>, transform_indices = @transform_5, window_bounds = array<i64: 128, 8>}, {pipeline_mode = #tpu.pipeline_mode<synchronous>, transform_indices = @transform_6, window_bounds = array<i64: 1, 8>}, {transform_indices = @transform_7, window_bounds = array<i64: 16, 8>}]} {
    %c0 = arith.constant 0 : index
    %c0_0 = arith.constant 0 : index
    %0 = vector.load %arg1[%c0, %c0_0] : memref<16x16xf32, #tpu.memory_space<vmem>>, vector<16x16xf32>
    %1 = arith.truncf %0 : vector<16x16xf32> to vector<16x16xbf16>
    %c0_1 = arith.constant 0 : index
    %c0_2 = arith.constant 0 : index
    %2 = vector.load %arg2[%c0_1, %c0_2] : memref<16x128xbf16, #tpu.memory_space<vmem>>, vector<16x128xbf16>
    %cst = arith.constant dense<0.000000e+00> : vector<16x128xf32>
    %3 = tpu.matmul %1, %2, %cst {dimension_numbers = #tpu.dot_dimension_numbers<[1], [0], [0], [1], [0, 0, 1, 1], [], []>} : vector<16x16xbf16>, vector<16x128xbf16>, vector<16x128xf32> -> vector<16x128xf32>
    %c0_3 = arith.constant 0 : index
    %c0_4 = arith.constant 0 : index
    %4 = vector.load %arg3[%c0_3, %c0_4] : memref<1x128xf32, #tpu.memory_space<vmem>>, vector<1x128xf32>
    %5 = vector.broadcast %4 : vector<1x128xf32> to vector<16x128xf32>
    %6 = arith.addf %3, %5 : vector<16x128xf32>
    %cst_5 = arith.constant 0.000000e+00 : f32
    %7 = vector.broadcast %cst_5 : f32 to vector<16x128xf32>
    %8 = arith.cmpf ogt, %6, %7 : vector<16x128xf32>
    %cst_6 = arith.constant 0.000000e+00 : f32
    %9 = vector.broadcast %cst_6 : f32 to vector<16x128xf32>
    %10 = arith.minimumf %6, %9 : vector<16x128xf32>
    %11 = math.exp %10 : vector<16x128xf32>
    %cst_7 = arith.constant 1.000000e+00 : f32
    %12 = vector.broadcast %cst_7 : f32 to vector<16x128xf32>
    %13 = arith.subf %11, %12 : vector<16x128xf32>
    %14 = arith.select %8, %6, %13 : vector<16x128xi1>, vector<16x128xf32>
    %15 = arith.truncf %14 : vector<16x128xf32> to vector<16x128xbf16>
    %c0_8 = arith.constant 0 : index
    %c0_9 = arith.constant 0 : index
    %16 = vector.load %arg4[%c0_8, %c0_9] : memref<128x128xbf16, #tpu.memory_space<vmem>>, vector<128x128xbf16>
    %cst_10 = arith.constant dense<0.000000e+00> : vector<16x128xf32>
    %17 = tpu.matmul %15, %16, %cst_10 {dimension_numbers = #tpu.dot_dimension_numbers<[1], [0], [0], [1], [0, 0, 1, 1], [], []>} : vector<16x128xbf16>, vector<128x128xbf16>, vector<16x128xf32> -> vector<16x128xf32>
    %c0_11 = arith.constant 0 : index
    %c0_12 = arith.constant 0 : index
    %18 = vector.load %arg5[%c0_11, %c0_12] : memref<1x128xf32, #tpu.memory_space<vmem>>, vector<1x128xf32>
    %19 = vector.broadcast %18 : vector<1x128xf32> to vector<16x128xf32>
    %20 = arith.addf %17, %19 : vector<16x128xf32>
    %cst_13 = arith.constant 5.000000e-01 : f32
    %21 = vector.broadcast %cst_13 : f32 to vector<16x128xf32>
    %22 = arith.mulf %21, %20 : vector<16x128xf32>
    %23 = math.tanh %22 : vector<16x128xf32>
    %cst_14 = arith.constant 5.000000e-01 : f32
    %24 = vector.broadcast %cst_14 : f32 to vector<16x128xf32>
    %25 = arith.mulf %24, %23 : vector<16x128xf32>
    %cst_15 = arith.constant 5.000000e-01 : f32
    %26 = vector.broadcast %cst_15 : f32 to vector<16x128xf32>
    %27 = arith.addf %25, %26 : vector<16x128xf32>
    %28 = arith.truncf %27 : vector<16x128xf32> to vector<16x128xbf16>
    %c0_16 = arith.constant 0 : index
    %c0_17 = arith.constant 0 : index
    %29 = vector.load %arg6[%c0_16, %c0_17] : memref<128x8xbf16, #tpu.memory_space<vmem>>, vector<128x8xbf16>
    %cst_18 = arith.constant dense<0.000000e+00> : vector<16x8xf32>
    %30 = tpu.matmul %28, %29, %cst_18 {dimension_numbers = #tpu.dot_dimension_numbers<[1], [0], [0], [1], [0, 0, 1, 1], [], []>} : vector<16x128xbf16>, vector<128x8xbf16>, vector<16x8xf32> -> vector<16x8xf32>
    %c0_19 = arith.constant 0 : index
    %c0_20 = arith.constant 0 : index
    %31 = vector.load %arg7[%c0_19, %c0_20] : memref<1x8xf32, #tpu.memory_space<vmem>>, vector<1x8xf32>
    %32 = vector.broadcast %31 : vector<1x8xf32> to vector<16x8xf32>
    %33 = arith.addf %30, %32 : vector<16x8xf32>
    %c0_21 = arith.constant 0 : index
    %c0_22 = arith.constant 0 : index
    %34 = vector.load %arg8[%c0_21, %c0_22] : memref<16x8xf32, #tpu.memory_space<vmem>>, vector<16x8xf32>
    tpu.vector_store %arg8[%c0_21, %c0_22], %33 {strides = array<i32>} : memref<16x8xf32, #tpu.memory_space<vmem>>, vector<16x8xf32>,
    return
  }
  func.func @transform_0(%arg0: i32) -> (i32, i32) {
    %c0_i32 = arith.constant 0 : i32
    %c0_i32_0 = arith.constant 0 : i32
    return %arg0, %c0_i32 : i32, i32
  }
  func.func @transform_1(%arg0: i32) -> (i32, i32) {
    %c0_i32 = arith.constant 0 : i32
    %c0_i32_0 = arith.constant 0 : i32
    %c0_i32_1 = arith.constant 0 : i32
    return %c0_i32, %c0_i32_0 : i32, i32
  }
  func.func @transform_2(%arg0: i32) -> (i32, i32) {
    %c0_i32 = arith.constant 0 : i32
    %c0_i32_0 = arith.constant 0 : i32
    %c0_i32_1 = arith.constant 0 : i32
    return %c0_i32, %c0_i32_0 : i32, i32
  }
  func.func @transform_3(%arg0: i32) -> (i32, i32) {
    %c0_i32 = arith.constant 0 : i32
    %c0_i32_0 = arith.constant 0 : i32
    %c0_i32_1 = arith.constant 0 : i32
    return %c0_i32, %c0_i32_0 : i32, i32
  }
  func.func @transform_4(%arg0: i32) -> (i32, i32) {
    %c0_i32 = arith.constant 0 : i32
    %c0_i32_0 = arith.constant 0 : i32
    %c0_i32_1 = arith.constant 0 : i32
    return %c0_i32, %c0_i32_0 : i32, i32
  }
  func.func @transform_5(%arg0: i32) -> (i32, i32) {
    %c0_i32 = arith.constant 0 : i32
    %c0_i32_0 = arith.constant 0 : i32
    %c0_i32_1 = arith.constant 0 : i32
    return %c0_i32, %c0_i32_0 : i32, i32
  }
  func.func @transform_6(%arg0: i32) -> (i32, i32) {
    %c0_i32 = arith.constant 0 : i32
    %c0_i32_0 = arith.constant 0 : i32
    %c0_i32_1 = arith.constant 0 : i32
    return %c0_i32, %c0_i32_0 : i32, i32
  }
  func.func @transform_7(%arg0: i32) -> (i32, i32) {
    %c0_i32 = arith.constant 0 : i32
    %c0_i32_0 = arith.constant 0 : i32
    return %arg0, %c0_i32 : i32, i32
  }
}

</mosaic_0001>

<bundles_post_ra>
// kernel: tpu_custom_call.1
= control target key start
LH: loop header
LB: loop body
LE: loop exit
PB: predicated region body
PF: predicated region fallthrough
CT: control target
= control target key end

     0   :  { %s836_s24 = smov 0   ;;  %s940_s0 = inlined_call_operand.vmem [shape: f32[48,16], index: 0, kind: input, shape index: {}]   ;;  %s941_s1 = inlined_call_operand.vmem [shape: bf16[16,128], index: 1, kind: input, shape index: {}]   ;;  %s942_s2 = inlined_call_operand.vmem [shape: f32[1,128], index: 2, kind: input, shape index: {}]   ;;  %s943_s3 = inlined_call_operand.vmem [shape: bf16[128,128], index: 3, kind: input, shape index: {}]   ;;  %s944_s4 = inlined_call_operand.vmem [shape: f32[1,128], index: 4, kind: input, shape index: {}]   ;;  %s945_s5 = inlined_call_operand.vmem [shape: bf16[128,8], index: 5, kind: input, shape index: {}]   ;;  %s946_s6 = inlined_call_operand.vmem [shape: f32[1,8], index: 6, kind: input, shape index: {}]   ;;  %s947_s7 = inlined_call_operand.vmem [shape: f32[48,8], index: 7, kind: output, shape index: {}]  }
   0x1 LB: > { %s651_s25 = sadd.s32 4294967295, %s792_s24   ;;  %p655_p0 = scmp.ge.s32.totalorder %s792_s24, 1  ;;  %s792_s24 = sphi %s836_s24, %s17_s24  }
   0x2   : > { %p238_p1 = scmp.lt.s32.totalorder %s792_s24, 4 }
   0x4   : > { %p239_p2 = pnand %p655_p0, %p238_p1 }
   0x5   : > { %s656_s28 = sshll.u32 (!%p239_p2), %s651_s25, 1 }
   0x6   : > { %242 = sbr.rel (%p239_p2) target bundleno = 660 (0x294), region = 48  ;;  %p271_p3 = scmp.lt.s32.totalorder (!%p239_p2), %s656_s28, 5 }
   0xb   : > { %v761_v0 = vld [vmem:[%s941_s1] sm:$0xff]   ;;  %v794_v1 = vmov 0.0   ;;  %v762_v2 = vld [vmem:[%s943_s3 + $0x38] sm:$0xff]   ;;  %vm795_vm0 = vmmov 0   ;;  %s949_s28 = smov (!%p271_p3, %s656_s28), 5  ;;  %vm301_vm1 = vcmask 130048  }
   0xc   : > { %705 = vmatprep.subr.bf16.mxu0 %v794_v1  ;;  %711 = vmatprep.subr.bf16.mxu1 %v794_v1  ;;  %s657_s8 = sshll.u32 %s949_s28, 3  ;;  %v763_v6 = vld [vmem:[%s943_s3 + $0x30] sm:$0xff]   ;;  %v764_v7 = vld [vmem:[%s943_s3 + $0x28] sm:$0xff]   ;;  %v765_v8 = vld [vmem:[%s943_s3 + $0x20] sm:$0xff]   ;;  %vm592_vm4 = vcmask 64512  }
   0xd   : > { %706 = vmatpush3.bf16.msra.mxu0 %v761_v0  ;;  %707 = vmatprep.mubr.msk.bf16.mxu0 %vm795_vm0, %v794_v1  ;;  %s274_s11 = scalar_lea.vmem %s940_s0, %s657_s8  ;;  %v766_v9 = vld [vmem:[%s943_s3 + $0x18] sm:$0xff]   ;;  %v767_v10 = vld [vmem:[%s943_s3 + $0x10] sm:$0xff]   ;;  %v768_v11 = vld [vmem:[%s943_s3 + $0x8] sm:$0xff]   ;;  %s280_s10 = scalar_lea.vmem %s947_s7, %s657_s8 }
   0xe   : > { %712 = vmatpush3.bf16.msra.mxu1 %v762_v2  ;;  %727 = vmatprep.mubr.msk.bf16.mxu1 %vm795_vm0, %v794_v1  ;;  %v283_v3 = vld [vmem:[%s274_s11] sm:$0xff]  ;;  %v284_v4 = vld [vmem:[%s274_s11 + $0x8] sm:$0xff]  ;;  %v770_v13 = vld [vmem:[%s945_s5 + $0x38] sm:$0xff]  }
   0xf   : > { %713 = vmatprep.subr.bf16.mxu1 %v794_v1  ;;  %731 = vmatprep.subr.bf16.mxu0 %v794_v1  ;;  %v285_v5 = vpack.c.bf16 %v284_v4, %v283_v3  ;;  %v769_v12 = vld [vmem:[%s943_s3] sm:$0xff]   ;;  %v771_v32 = vld [vmem:[%s945_s5 + $0x30] sm:$0xff]   ;;  %v772_v33 = vld [vmem:[%s945_s5 + $0x28] sm:$0xff]  }
  0x10   : > { %v660_v14 = vld [vmem:[%s942_s2] ss:$0 sm:$0xff]  ;;  %v774_v35 = vld [vmem:[%s945_s5 + $0x18] sm:$0xff]   ;;  %v775_v36 = vld [vmem:[%s945_s5 + $0x10] sm:$0xff]  }
  0x11   : > { %708 = vmatmul.mubr.msk.bf16.vlgmr.msra.gmra.mxu0 %vm301_vm1, %v285_v5  ;;  %v773_v34 = vld [vmem:[%s945_s5 + $0x20] sm:$0xff]   ;;  %v776_v37 = vld [vmem:[%s945_s5 + $0x8] sm:$0xff]  }
  0x12   : > { %747 = vmatprep.mubr.msk.bf16.mxu0 %vm795_vm0, %v794_v1  ;;  %714 = vmatpush3.bf16.msra.mxu1 %v763_v6  ;;  %v777_v38 = vld [vmem:[%s945_s5] sm:$0xff]  }
  0x13   : > { %715 = vmatprep.subr.bf16.mxu1 %v794_v1  ;;  %732 = vmatpush3.bf16.msra.mxu0 %v770_v13  ;;  %v665_v39 = vld [vmem:[%s944_s4] ss:$0 sm:$0xff] }
  0x14   : > { %733 = vmatprep.subr.bf16.mxu0 %v794_v1  ;;  %v674_v55 = vld [vmem:[%s946_s6] ss:$0 sm:$0xff] }
  0x16   : > { %716 = vmatpush3.bf16.msra.mxu1 %v764_v7 }
  0x17   : > { %717 = vmatprep.subr.bf16.mxu1 %v794_v1  ;;  %734 = vmatpush3.bf16.msra.mxu0 %v771_v32 }
  0x18   : > { %735 = vmatprep.subr.bf16.mxu0 %v794_v1 }
  0x1a   : > { %718 = vmatpush3.bf16.msra.mxu1 %v765_v8 }
  0x1b   : > { %719 = vmatprep.subr.bf16.mxu1 %v794_v1  ;;  %736 = vmatpush3.bf16.msra.mxu0 %v772_v33 }
  0x1c   : > { %737 = vmatprep.subr.bf16.mxu0 %v794_v1 }
  0x1e   : > { %720 = vmatpush3.bf16.msra.mxu1 %v766_v9 }
  0x1f   : > { %721 = vmatprep.subr.bf16.mxu1 %v794_v1  ;;  %738 = vmatpush3.bf16.msra.mxu0 %v773_v34 }
  0x20   : > { %739 = vmatprep.subr.bf16.mxu0 %v794_v1 }
  0x22   : > { %722 = vmatpush3.bf16.msra.mxu1 %v767_v10 }
  0x23   : > { %723 = vmatprep.subr.bf16.mxu1 %v794_v1  ;;  %740 = vmatpush3.bf16.msra.mxu0 %v774_v35 }
  0x24   : > { %741 = vmatprep.subr.bf16.mxu0 %v794_v1 }
  0x26   : > { %724 = vmatpush3.bf16.msra.mxu1 %v768_v11 }
  0x27   : > { %725 = vmatprep.subr.bf16.mxu1 %v794_v1  ;;  %742 = vmatpush3.bf16.msra.mxu0 %v775_v36 }
  0x28   : > { %743 = vmatprep.subr.bf16.mxu0 %v794_v1 }
  0x2a   : > { %726 = vmatpush3.bf16.msra.mxu1 %v769_v12 }
  0x2b   : > { %744 = vmatpush3.bf16.msra.mxu0 %v776_v37 }
  0x2c   : > { %745 = vmatprep.subr.bf16.mxu0 %v794_v1 }
  0x2f   : > { %746 = vmatpush3.bf16.msra.mxu0 %v777_v38 }
  0xd1   : > { %v339_v15 = vpop.f32.mrf.mxu0 }
  0xd2   : > { %v340_v16 = vadd.f32 %v660_v14, %v339_v15 }
  0xd3   : > { %v709_v17 = vpop.f32.mrf.mxu0 }
  0xd4   : > { %v348_v18 = vmin.f32 %v340_v16, 0.0  ;;  %vm346_vm2 = vcmp.gt.f32.partialorder %v340_v16, 0.0 }
  0xd5   : > { %v342_v19 = vpop.f32.mrf.mxu0 }
  0xd6   : > { %v350_v20 = vmul.f32 1.442695, %v348_v18  ;;  %v343_v21 = vadd.f32 %v660_v14, %v342_v19 }
  0xd7   : > { %v710_v22 = vpop.f32.mrf.mxu0 }
  0xd8   : > { %778 = vpow2.f32 %v350_v20  ;;  %v349_v23 = vmin.f32 %v343_v21, 0.0  ;;  %vm347_vm3 = vcmp.gt.f32.partialorder %v343_v21, 0.0 }
  0xda   : > { %v352_v24 = vmul.f32 1.442695, %v349_v23 }
  0xdc   : > { %780 = vpow2.f32 %v352_v24 }
  0xe5   : > { %v779_v25 = vpop.eup %778 }
  0xe6   : > { %v663_v26 = vadd.f32 -1.0, %v779_v25 }
  0xe8   : > { %v356_v29 = vsel %vm346_vm2, %v340_v16, %v663_v26 }
  0xe9   : > { %v781_v27 = vpop.eup %780 }
  0xea   : > { %v664_v28 = vadd.f32 -1.0, %v781_v27 }
  0xec   : > { %v357_v30 = vsel %vm347_vm3, %v343_v21, %v664_v28 }
  0xed   : > { %v358_v31 = vpack.c.bf16 %v357_v30, %v356_v29 }
  0xef   : > { %728 = vmatmul.mubr.bf16.vlgmr.msra.gmra.mxu1 %v358_v31 }
 0x1af   : > { %v464_v40 = vpop.f32.mrf.mxu1 }
 0x1b0   : > { %v465_v41 = vadd.f32 %v665_v39, %v464_v40 }
 0x1b1   : > { %v729_v42 = vpop.f32.mrf.mxu1 }
 0x1b2   : > { %v471_v43 = vmul.f32 0.5, %v465_v41 }
 0x1b3   : > { %v467_v44 = vpop.f32.mrf.mxu1 }
 0x1b4   : > { %782 = vtanh.f32 %v471_v43  ;;  %v468_v45 = vadd.f32 %v665_v39, %v467_v44 }
 0x1b5   : > { %v730_v46 = vpop.f32.mrf.mxu1 }
 0x1b6   : > { %v472_v47 = vmul.f32 0.5, %v468_v45 }
 0x1b8   : > { %784 = vtanh.f32 %v472_v47 }
 0x1c1   : > { %v783_v48 = vpop.eup %782 }
 0x1c2   : > { %v475_v49 = vmul.f32 0.5, %v783_v48 }
 0x1c4   : > { %v477_v52 = vadd.f32 0.5, %v475_v49 }
 0x1c5   : > { %v785_v50 = vpop.eup %784 }
 0x1c6   : > { %v476_v51 = vmul.f32 0.5, %v785_v50 }
 0x1c8   : > { %v478_v53 = vadd.f32 0.5, %v476_v51 }
 0x1ca   : > { %v479_v54 = vpack.c.bf16 %v478_v53, %v477_v52 }
 0x1cc   : > { %748 = vmatmul.mubr.bf16.vlgmr.msra.gmra.mxu0 %v479_v54 }
 0x28c   : > { %v585_v56 = vpop.f32.mrf.mxu0 }
 0x28d   : > { %v586_v57 = vadd.f32 %v674_v55, %v585_v56 }
 0x28e   : > { %v749_v58 = vpop.f32.mrf.mxu0 }
 0x28f   : > { %593 = vst.msk [vmem:[%s280_s10] sm:$0xff] %vm592_vm4, %v586_v57 }
 0x290   : > { %v588_v59 = vpop.f32.mrf.mxu0 }
 0x291   : > { %v589_v60 = vadd.f32 %v674_v55, %v588_v59 }
 0x292   : > { %v750_v61 = vpop.f32.mrf.mxu0 }
 0x293   : > { %594 = vst.msk [vmem:[%s280_s10 + $0x8] sm:$0xff] %vm592_vm4, %v589_v60 }
 0x294 PF: > { %s17_s24 = sadd.s32 1, %s792_s24  }
 0x295   : > { %p14_p4 = scmp.ge.s32.totalorder %s17_s24, 5  }
 0x297   :  { %16 = sbr.rel (!%p14_p4) target bundleno = 1 (0x1), region = 78 }

</bundles_post_ra>
